<compile_context>
chip_gen: v7x
topology: tpu7x:2x2x1
jax: 0.10.0
libtpu: 0.0.40
codegen_flags: <defaults>
</compile_context>

<pallas_src>
import functools

import jax
import jax.numpy as jnp
import numpy as np
from jax.experimental import pallas as pl
from jax.experimental.pallas import tpu as pltpu

_LANE = 128
_SUBLANE_BYTES = 32  # one packed sublane group is 32 B per lane column, any dtype


def _round_up(x, m):
    return ((x + m - 1) // m) * m


def _cdiv(a, b):
    return -(-a // b)


def _vmem_capacity_bytes():
    """Physical VMEM of the local TPU (128 MiB v5e/v6e, 64 MiB per-TC v7x)."""
    try:
        cap = int(pltpu.get_tpu_info().vmem_capacity_bytes)
        if cap >= (32 << 20):
            return cap
    except Exception:
        pass
    return 64 << 20  # conservative fallback (v7x per-TensorCore VMEM)


def _dice_partial_kernel(pred_ref, lab_ref, p2_ref, g2_ref, pg_ref, *,
                         d, tile_d, k_per_split, may_mask):
    k = pl.program_id(2)

    @pl.when(k == 0)
    def _():
        p2_ref[...] = jnp.zeros_like(p2_ref)
        g2_ref[...] = jnp.zeros_like(g2_ref)
        pg_ref[...] = jnp.zeros_like(pg_ref)

    def accumulate(o, g):
        p2_ref[...] += jnp.sum(o * o, axis=1, keepdims=True)
        g2_ref[...] += jnp.sum(g * g, axis=1, keepdims=True)
        pg_ref[...] += jnp.sum(o * g, axis=1, keepdims=True)

    if may_mask:
        col0 = (pl.program_id(0) * k_per_split + k) * tile_d
        full = (col0 + tile_d) <= d

        @pl.when(full)
        def _():
            accumulate(pred_ref[...].astype(jnp.float32),
                       lab_ref[...].astype(jnp.float32))

        @pl.when(jnp.logical_not(full))
        def _():
            col = col0 + jax.lax.broadcasted_iota(jnp.int32, pred_ref.shape, 1)
            keep = col < d
            # Select (not multiply): unspecified data past column d in a
            # partial / fully out-of-range block contributes exactly zero.
            accumulate(jnp.where(keep, pred_ref[...].astype(jnp.float32), 0.0),
                       jnp.where(keep, lab_ref[...].astype(jnp.float32), 0.0))
    else:
        accumulate(pred_ref[...].astype(jnp.float32),
                   lab_ref[...].astype(jnp.float32))


def _dice_partial_kernel_void(pred_ref, lab_ref, void_ref,
                              p2_ref, g2_ref, pg_ref, *,
                              d, tile_d, k_per_split, may_mask):
    k = pl.program_id(2)

    @pl.when(k == 0)
    def _():
        p2_ref[...] = jnp.zeros_like(p2_ref)
        g2_ref[...] = jnp.zeros_like(g2_ref)
        pg_ref[...] = jnp.zeros_like(pg_ref)

    def w_void():
        # torch.le(void_pixels, 0.5).float()  (a compare is never NaN)
        return (void_ref[...].astype(jnp.float32) <= jnp.float32(0.5)).astype(jnp.float32)

    def accumulate(o, g, w):
        p2_ref[...] += jnp.sum(o * o * w, axis=1, keepdims=True)
        g2_ref[...] += jnp.sum(g * g * w, axis=1, keepdims=True)
        pg_ref[...] += jnp.sum(o * g * w, axis=1, keepdims=True)

    if may_mask:
        col0 = (pl.program_id(0) * k_per_split + k) * tile_d
        full = (col0 + tile_d) <= d

        @pl.when(full)
        def _():
            accumulate(pred_ref[...].astype(jnp.float32),
                       lab_ref[...].astype(jnp.float32), w_void())

        @pl.when(jnp.logical_not(full))
        def _():
            col = col0 + jax.lax.broadcasted_iota(jnp.int32, pred_ref.shape, 1)
            keep = col < d
            accumulate(jnp.where(keep, pred_ref[...].astype(jnp.float32), 0.0),
                       jnp.where(keep, lab_ref[...].astype(jnp.float32), 0.0),
                       w_void())
    else:
        accumulate(pred_ref[...].astype(jnp.float32),
                   lab_ref[...].astype(jnp.float32), w_void())


def dice_loss(output, label, void_pixels=None, smooth=1e-8, *, max_tile_d=None):
    """Pallas implementation of dice_loss. output/label: (N, C, H, W) -> scalar.

    `max_tile_d` is an optional testing/tuning cap on the reduction tile size.
    """
    assert output.shape == label.shape
    n = output.shape[0]
    d = int(np.prod(output.shape[1:]))

    args = [jnp.reshape(output, (n, d)), jnp.reshape(label, (n, d))]
    if void_pixels is not None:
        assert void_pixels.shape == output.shape
        args.append(jnp.reshape(void_pixels, (n, d)))

    # --- sublane fold: (n, d) -> (n*r, d//r) is a free row-major reshape that
    # fills the 8 f32 sublanes for small batches (kernel stays HBM-bound
    # instead of going VALU-bound on 3/4-empty vregs).  Per-sample sums are
    # recovered in the wrapper by summing the r folded rows.
    r = 1
    if n < 8:
        for cand in range(max(1, 8 // n), 0, -1):
            if d % cand == 0:
                r = cand
                break
    n2, d2 = n * r, d // r
    if r > 1:
        args = [a.reshape(n2, d2) for a in args]

    # --- batch tiling
    tile_n = 8 if (n2 > 8 and n2 % 8 == 0) else n2
    b_blocks = n2 // tile_n

    # --- split the reduction across a leading parallel axis when the batch
    # axis has a single program, so both v7x TensorCores get work.
    split = 2 if (b_blocks == 1 and d2 >= 2 * _LANE) else 1

    # --- reduction-tile sizing from the PHYSICAL (sublane-padded) footprint of
    # the double-buffered input blocks, derived from the chip's VMEM capacity.
    itemsizes = [jnp.dtype(a.dtype).itemsize for a in args]
    per_col_phys = sum(_round_up(tile_n, _SUBLANE_BYTES // isz) * isz
                       for isz in itemsizes)
    vmem_cap = _vmem_capacity_bytes()
    input_budget = (vmem_cap * 11) // 20            # ~55% of VMEM for inputs
    max_td = max(_LANE, (input_budget // (2 * per_col_phys)) // _LANE * _LANE)
    if max_tile_d is not None:
        max_td = min(max_td, max(_LANE, (int(max_tile_d) // _LANE) * _LANE))
    tile_d = min(max_td, _round_up(_cdiv(d2, split), _LANE))

    total_k = _cdiv(d2, tile_d)
    if total_k < split:
        split = 1
    k_per_split = _cdiv(total_k, split)
    may_mask = split * k_per_split * tile_d > d2    # partial / out-of-range tiles

    if split * k_per_split == total_k:
        def in_index_map(s, i, k):
            return (i, s * k_per_split + k)
    else:
        # Clamp duplicated out-of-range tiles onto a valid block; the kernel
        # masks them to zero based on the *unclamped* column index.
        def in_index_map(s, i, k):
            return (i, jnp.minimum(s * k_per_split + k, total_k - 1))

    grid = (split, b_blocks, k_per_split)
    in_spec = pl.BlockSpec((tile_n, tile_d), in_index_map)
    out_spec = pl.BlockSpec((None, tile_n, 1), lambda s, i, k: (s, i, 0))

    kern = (_dice_partial_kernel_void if void_pixels is not None
            else _dice_partial_kernel)
    kernel = functools.partial(kern, d=d2, tile_d=tile_d,
                               k_per_split=k_per_split, may_mask=may_mask)

    # VMEM limit derived from the actual double-buffered footprint (+ headroom
    # for outputs / compiler scratch), capped below physical VMEM.
    in_vmem = 2 * per_col_phys * tile_d
    vmem_limit = min(int(vmem_cap * 0.85), max(in_vmem + (8 << 20), 16 << 20))

    flops_per_elem = 10 if void_pixels is not None else 6
    cost = pl.CostEstimate(
        flops=flops_per_elem * n * d,
        transcendentals=0,
        bytes_accessed=sum(n * d * isz for isz in itemsizes) + 3 * split * n2 * 4,
    )

    out_shape = jax.ShapeDtypeStruct((split, n2, 1), jnp.float32)
    p2, g2, pg = pl.pallas_call(
        kernel,
        out_shape=(out_shape, out_shape, out_shape),
        grid_spec=pltpu.PrefetchScalarGridSpec(
            num_scalar_prefetch=0,
            grid=grid,
            in_specs=[in_spec] * len(args),
            out_specs=(out_spec, out_spec, out_spec),
        ),
        compiler_params=pltpu.CompilerParams(
            dimension_semantics=("parallel", "parallel", "arbitrary"),
            vmem_limit_bytes=vmem_limit,
        ),
        cost_estimate=cost,
    )(*args)

    # Tiny epilogue in XLA: combine D-splits + folded rows, then the dice ratio.
    p2 = p2[:, :, 0].reshape(split, n, r).sum(axis=(0, 2))
    g2 = g2[:, :, 0].reshape(split, n, r).sum(axis=(0, 2))
    pg = pg[:, :, 0].reshape(split, n, r).sum(axis=(0, 2))
    per_sample = 1.0 - (2.0 * pg) / (p2 + g2 + jnp.float32(smooth))
    return jnp.sum(per_sample) / jnp.float32(n)


class DiceLoss:
    """Mirror of the PyTorch module's interface."""

    def __init__(self, void_pixels=None, smooth=1e-8):
        self.void_pixels = void_pixels
        self.smooth = smooth

    def __call__(self, output, label):
        return dice_loss(output, label, self.void_pixels, self.smooth)


def _dice_loss_ref(output, label, void_pixels=None, smooth=1e-8):
    """Pure-JAX reference matching the PyTorch dice_loss."""
    o = output.astype(jnp.float32)
    g = label.astype(jnp.float32)
    p2, g2, pg = o * o, g * g, o * g
    if void_pixels is not None:
        w = (void_pixels.astype(jnp.float32) <= 0.5).astype(jnp.float32)
        p2, g2, pg = p2 * w, g2 * w, pg * w
    axes = tuple(range(1, output.ndim))
    p2 = jnp.sum(p2, axis=axes)
    g2 = jnp.sum(g2, axis=axes)
    pg = jnp.sum(pg, axis=axes)
    per = 1.0 - (2.0 * pg) / (p2 + g2 + smooth)
    return jnp.sum(per) / output.shape[0]


if __name__ == "__main__":
    key = jax.random.PRNGKey(0)
    k_out, k_lab, k_void, k_out2, k_lab2, k_out3, k_lab3, k_void3 = jax.random.split(key, 8)

    # "Sigmoid should be applied before applying this loss."
    N, C, H, W = 2, 4, 16, 16
    output = jax.nn.sigmoid(jax.random.normal(k_out, (N, C, H, W), jnp.float32))
    label = jax.random.bernoulli(k_lab, 0.5, (N, C, H, W)).astype(jnp.float32)

    # 1) Default module config: void_pixels=None.
    loss = jax.block_until_ready(DiceLoss()(output, label))
    ref = _dice_loss_ref(output, label)
    np.testing.assert_allclose(np.asarray(loss), np.asarray(ref), rtol=1e-5, atol=1e-6)

    # 2) With a void-pixel mask.
    void = jax.random.bernoulli(k_void, 0.1, (N, C, H, W)).astype(jnp.float32)
    loss_v = jax.block_until_ready(dice_loss(output, label, void_pixels=void))
    ref_v = _dice_loss_ref(output, label, void_pixels=void)
    np.testing.assert_allclose(np.asarray(loss_v), np.asarray(ref_v), rtol=1e-5, atol=1e-6)

    # 3) Odd spatial extent -> exercises the partial-tile in-kernel masking.
    out_odd = jax.nn.sigmoid(jax.random.normal(k_out2, (2, 1, 15, 17), jnp.float32))
    lab_odd = jax.random.bernoulli(k_lab2, 0.5, (2, 1, 15, 17)).astype(jnp.float32)
    loss_odd = jax.block_until_ready(dice_loss(out_odd, lab_odd))
    ref_odd = _dice_loss_ref(out_odd, lab_odd)
    np.testing.assert_allclose(np.asarray(loss_odd), np.asarray(ref_odd),
                               rtol=1e-5, atol=1e-6)

    # 4) Forced small tile -> exercises the dual-core D-split with an uneven
    #    tile count (clamped out-of-range tile + masked partial tile + void).
    out_sp = jax.nn.sigmoid(jax.random.normal(k_out3, (2, 4, 16, 18), jnp.float32))
    lab_sp = jax.random.bernoulli(k_lab3, 0.5, (2, 4, 16, 18)).astype(jnp.float32)
    void_sp = jax.random.bernoulli(k_void3, 0.1, (2, 4, 16, 18)).astype(jnp.float32)
    loss_sp = jax.block_until_ready(
        dice_loss(out_sp, lab_sp, void_pixels=void_sp, max_tile_d=128))
    ref_sp = _dice_loss_ref(out_sp, lab_sp, void_pixels=void_sp)
    np.testing.assert_allclose(np.asarray(loss_sp), np.asarray(ref_sp),
                               rtol=1e-5, atol=1e-6)

    print("KERNEL_OK")
</pallas_src>

<mosaic_0001>
module attributes {stable_mosaic.version = 11 : i64} {
  func.func @_dice_partial_kernel(%arg0: i32, %arg1: i32, %arg2: i32, %arg3: memref<8x128xf32, #tpu.memory_space<vmem>>, %arg4: memref<8x128xf32, #tpu.memory_space<vmem>>, %arg5: memref<1x8x1xf32, #tpu.memory_space<vmem>>, %arg6: memref<1x8x1xf32, #tpu.memory_space<vmem>>, %arg7: memref<1x8x1xf32, #tpu.memory_space<vmem>>) attributes {dimension_semantics = [#tpu.dimension_semantics<parallel>, #tpu.dimension_semantics<parallel>, #tpu.dimension_semantics<arbitrary>], iteration_bounds = array<i64: 2, 1, 1>, scalar_prefetch = 0 : i64, scratch_operands = 0 : i64, tpu.core_type = #tpu.core_type<tc>, window_params = [{transform_indices = @transform_0, window_bounds = array<i64: 8, 128>}, {transform_indices = @transform_1, window_bounds = array<i64: 8, 128>}, {transform_indices = @transform_2, window_bounds = array<i64: 1, 8, 1>}, {transform_indices = @transform_3, window_bounds = array<i64: 1, 8, 1>}, {transform_indices = @transform_4, window_bounds = array<i64: 1, 8, 1>}]} {
    %c0_i32 = arith.constant 0 : i32
    %0 = arith.cmpi eq, %arg2, %c0_i32 : i32
    %1 = arith.extui %0 : i1 to i32
    %c0_i32_0 = arith.constant 0 : i32
    %2 = arith.cmpi ne, %1, %c0_i32_0 : i32
    scf.if %2 {
      %cst_24 = arith.constant 0.000000e+00 : f32
      %32 = vector.broadcast %cst_24 : f32 to vector<8x1xf32>
      %c0_25 = arith.constant 0 : index
      %c0_26 = arith.constant 0 : index
      %c0_27 = arith.constant 0 : index
      %33 = vector.load %arg5[%c0_25, %c0_26, %c0_27] : memref<1x8x1xf32, #tpu.memory_space<vmem>>, vector<1x8x1xf32>
      %34 = vector.shape_cast %33 : vector<1x8x1xf32> to vector<8x1xf32>
      %35 = vector.shape_cast %32 : vector<8x1xf32> to vector<1x8x1xf32>
      tpu.vector_store %arg5[%c0_25, %c0_26, %c0_27], %35 {strides = array<i32>} : memref<1x8x1xf32, #tpu.memory_space<vmem>>, vector<1x8x1xf32>,
      %cst_28 = arith.constant 0.000000e+00 : f32
      %36 = vector.broadcast %cst_28 : f32 to vector<8x1xf32>
      %c0_29 = arith.constant 0 : index
      %c0_30 = arith.constant 0 : index
      %c0_31 = arith.constant 0 : index
      %37 = vector.load %arg6[%c0_29, %c0_30, %c0_31] : memref<1x8x1xf32, #tpu.memory_space<vmem>>, vector<1x8x1xf32>
      %38 = vector.shape_cast %37 : vector<1x8x1xf32> to vector<8x1xf32>
      %39 = vector.shape_cast %36 : vector<8x1xf32> to vector<1x8x1xf32>
      tpu.vector_store %arg6[%c0_29, %c0_30, %c0_31], %39 {strides = array<i32>} : memref<1x8x1xf32, #tpu.memory_space<vmem>>, vector<1x8x1xf32>,
      %cst_32 = arith.constant 0.000000e+00 : f32
      %40 = vector.broadcast %cst_32 : f32 to vector<8x1xf32>
      %c0_33 = arith.constant 0 : index
      %c0_34 = arith.constant 0 : index
      %c0_35 = arith.constant 0 : index
      %41 = vector.load %arg7[%c0_33, %c0_34, %c0_35] : memref<1x8x1xf32, #tpu.memory_space<vmem>>, vector<1x8x1xf32>
      %42 = vector.shape_cast %41 : vector<1x8x1xf32> to vector<8x1xf32>
      %43 = vector.shape_cast %40 : vector<8x1xf32> to vector<1x8x1xf32>
      tpu.vector_store %arg7[%c0_33, %c0_34, %c0_35], %43 {strides = array<i32>} : memref<1x8x1xf32, #tpu.memory_space<vmem>>, vector<1x8x1xf32>,
    } else {
    }
    %c0 = arith.constant 0 : index
    %c0_1 = arith.constant 0 : index
    %3 = vector.load %arg3[%c0, %c0_1] : memref<8x128xf32, #tpu.memory_space<vmem>>, vector<8x128xf32>
    %c0_2 = arith.constant 0 : index
    %c0_3 = arith.constant 0 : index
    %4 = vector.load %arg4[%c0_2, %c0_3] : memref<8x128xf32, #tpu.memory_space<vmem>>, vector<8x128xf32>
    %c0_4 = arith.constant 0 : index
    %c0_5 = arith.constant 0 : index
    %c0_6 = arith.constant 0 : index
    %5 = vector.load %arg5[%c0_4, %c0_5, %c0_6] : memref<1x8x1xf32, #tpu.memory_space<vmem>>, vector<1x8x1xf32>
    %6 = vector.shape_cast %5 : vector<1x8x1xf32> to vector<8x1xf32>
    %7 = arith.mulf %3, %3 : vector<8x128xf32>
    %cst = arith.constant dense<0.000000e+00> : vector<8xf32>
    %8 = vector.multi_reduction <add>, %7, %cst [1] : vector<8x128xf32> to vector<8xf32>
    %9 = vector.shape_cast %8 : vector<8xf32> to vector<8x1xf32>
    %10 = arith.addf %6, %9 : vector<8x1xf32>
    %c0_7 = arith.constant 0 : index
    %c0_8 = arith.constant 0 : index
    %c0_9 = arith.constant 0 : index
    %11 = vector.load %arg5[%c0_7, %c0_8, %c0_9] : memref<1x8x1xf32, #tpu.memory_space<vmem>>, vector<1x8x1xf32>
    %12 = vector.shape_cast %11 : vector<1x8x1xf32> to vector<8x1xf32>
    %13 = vector.shape_cast %10 : vector<8x1xf32> to vector<1x8x1xf32>
    tpu.vector_store %arg5[%c0_7, %c0_8, %c0_9], %13 {strides = array<i32>} : memref<1x8x1xf32, #tpu.memory_space<vmem>>, vector<1x8x1xf32>,
    %c0_10 = arith.constant 0 : index
    %c0_11 = arith.constant 0 : index
    %c0_12 = arith.constant 0 : index
    %14 = vector.load %arg6[%c0_10, %c0_11, %c0_12] : memref<1x8x1xf32, #tpu.memory_space<vmem>>, vector<1x8x1xf32>
    %15 = vector.shape_cast %14 : vector<1x8x1xf32> to vector<8x1xf32>
    %16 = arith.mulf %4, %4 : vector<8x128xf32>
    %cst_13 = arith.constant dense<0.000000e+00> : vector<8xf32>
    %17 = vector.multi_reduction <add>, %16, %cst_13 [1] : vector<8x128xf32> to vector<8xf32>
    %18 = vector.shape_cast %17 : vector<8xf32> to vector<8x1xf32>
    %19 = arith.addf %15, %18 : vector<8x1xf32>
    %c0_14 = arith.constant 0 : index
    %c0_15 = arith.constant 0 : index
    %c0_16 = arith.constant 0 : index
    %20 = vector.load %arg6[%c0_14, %c0_15, %c0_16] : memref<1x8x1xf32, #tpu.memory_space<vmem>>, vector<1x8x1xf32>
    %21 = vector.shape_cast %20 : vector<1x8x1xf32> to vector<8x1xf32>
    %22 = vector.shape_cast %19 : vector<8x1xf32> to vector<1x8x1xf32>
    tpu.vector_store %arg6[%c0_14, %c0_15, %c0_16], %22 {strides = array<i32>} : memref<1x8x1xf32, #tpu.memory_space<vmem>>, vector<1x8x1xf32>,
    %c0_17 = arith.constant 0 : index
    %c0_18 = arith.constant 0 : index
    %c0_19 = arith.constant 0 : index
    %23 = vector.load %arg7[%c0_17, %c0_18, %c0_19] : memref<1x8x1xf32, #tpu.memory_space<vmem>>, vector<1x8x1xf32>
    %24 = vector.shape_cast %23 : vector<1x8x1xf32> to vector<8x1xf32>
    %25 = arith.mulf %3, %4 : vector<8x128xf32>
    %cst_20 = arith.constant dense<0.000000e+00> : vector<8xf32>
    %26 = vector.multi_reduction <add>, %25, %cst_20 [1] : vector<8x128xf32> to vector<8xf32>
    %27 = vector.shape_cast %26 : vector<8xf32> to vector<8x1xf32>
    %28 = arith.addf %24, %27 : vector<8x1xf32>
    %c0_21 = arith.constant 0 : index
    %c0_22 = arith.constant 0 : index
    %c0_23 = arith.constant 0 : index
    %29 = vector.load %arg7[%c0_21, %c0_22, %c0_23] : memref<1x8x1xf32, #tpu.memory_space<vmem>>, vector<1x8x1xf32>
    %30 = vector.shape_cast %29 : vector<1x8x1xf32> to vector<8x1xf32>
    %31 = vector.shape_cast %28 : vector<8x1xf32> to vector<1x8x1xf32>
    tpu.vector_store %arg7[%c0_21, %c0_22, %c0_23], %31 {strides = array<i32>} : memref<1x8x1xf32, #tpu.memory_space<vmem>>, vector<1x8x1xf32>,
    return
  }
  func.func @transform_0(%arg0: i32, %arg1: i32, %arg2: i32) -> (i32, i32) {
    %c1_i32 = arith.constant 1 : i32
    %0 = arith.muli %arg0, %c1_i32 : i32
    %1 = arith.addi %0, %arg2 : i32
    %c0_i32 = arith.constant 0 : i32
    return %arg1, %1 : i32, i32
  }
  func.func @transform_1(%arg0: i32, %arg1: i32, %arg2: i32) -> (i32, i32) {
    %c1_i32 = arith.constant 1 : i32
    %0 = arith.muli %arg0, %c1_i32 : i32
    %1 = arith.addi %0, %arg2 : i32
    %c0_i32 = arith.constant 0 : i32
    return %arg1, %1 : i32, i32
  }
  func.func @transform_2(%arg0: i32, %arg1: i32, %arg2: i32) -> (i32, i32, i32) {
    %c0_i32 = arith.constant 0 : i32
    %c0_i32_0 = arith.constant 0 : i32
    return %arg0, %arg1, %c0_i32 : i32, i32, i32
  }
  func.func @transform_3(%arg0: i32, %arg1: i32, %arg2: i32) -> (i32, i32, i32) {
    %c0_i32 = arith.constant 0 : i32
    %c0_i32_0 = arith.constant 0 : i32
    return %arg0, %arg1, %c0_i32 : i32, i32, i32
  }
  func.func @transform_4(%arg0: i32, %arg1: i32, %arg2: i32) -> (i32, i32, i32) {
    %c0_i32 = arith.constant 0 : i32
    %c0_i32_0 = arith.constant 0 : i32
    return %arg0, %arg1, %c0_i32 : i32, i32, i32
  }
}

</mosaic_0001>

<bundles_post_ra>
// kernel: tpu_custom_call.1
= control target key start
LH: loop header
LB: loop body
LE: loop exit
PB: predicated region body
PF: predicated region fallthrough
CT: control target
= control target key end

     0   :  { %10 = vsyncpa [#allocation3], 0  ;;  %s961_s0 = inlined_call_operand.hbm [shape: f32[8,256], index: 0, kind: input, shape index: {}]   ;;  %s962_s1 = inlined_call_operand.hbm [shape: f32[8,256], index: 1, kind: input, shape index: {}]   ;;  %s963_s2 = inlined_call_operand.vmem [shape: f32[2,8,1], index: 2, kind: output, shape index: {0}]   ;;  %s964_s3 = inlined_call_operand.vmem [shape: f32[2,8,1], index: 3, kind: output, shape index: {1}]   ;;  %s965_s4 = inlined_call_operand.vmem [shape: f32[2,8,1], index: 4, kind: output, shape index: {2}]  }
   0x1   :  { %12 = vsyncpa [#allocation3 + $0x1], 0 }
   0x2   :  { %13 = vsyncpa [#allocation5], 0 }
   0x3   :  { %15 = vsyncpa [#allocation5 + $0x1], 0  ;;  %s777_s15 = smov 0   ;;  %s779_s16 = smov 0  }
   0x4   :  { %s781_s17 = smov 0   ;;  %s783_s18 = smov 0  }
   0x5   :  { %s785_s19 = smov 0   ;;  %s787_s20 = smov 0  }
   0x6 LB: > { %s556_s21 = sadd.s32 4294967295, %s747_s20   ;;  %s40_s22 = sadd.s32 1, %s743_s19  ;;  %s747_s20 = sphi %s787_s20, %s21_s20   ;;  %s743_s19 = sphi %s785_s19, %s979_s19   ;;  %s739_s18 = sphi %s783_s18, %s978_s18   ;;  %s735_s17 = sphi %s781_s17, %s977_s17   ;;  %s731_s16 = sphi %s779_s16, %s976_s16   ;;  %s727_s15 = sphi %s777_s15, %s975_s15  }
   0x7   : > { %p42_p0 = scmp.ge.s32.totalorder %s40_s22, 2  ;;  %s51_s23 = sadd.s32 1, %s735_s17 }
   0x8   : > { %p58_p1 = scmp.ne.s32.totalorder %s735_s17, %s731_s16  ;;  %p59_p2 = scmp.eq.s32.totalorder %s747_s20, 0 }
   0x9   : > { %s981_s22 = smov (%p42_p0, %s40_s22), 0  ;;  %p64_p4 = scmp.ne.s32.totalorder %s731_s16, %s727_s15 }
   0xa   : > { %p813_p3 = por %p59_p2, %p58_p1  ;;  %s47_s25 = ssub.s32 %s743_s19, %s981_s22 }
   0xb   : > { %p65_p5 = scmp.eq.s32.totalorder %s556_s21, 0  ;;  %p49_p6 = scmp.eq.s32.totalorder %s47_s25, 0 }
   0xc   : > { %p583_p8 = scmp.lt.s32.totalorder %s747_s20, 2  ;;  %s829_s28 = sand.u32 1, %s735_s17  }
   0xd   : > { %p820_p7 = por %p65_p5, %p64_p4  ;;  %s561_s29 = sshll.u32 %s743_s19, 7 }
   0xe   : > { %s826_s27 = scalar_select %p49_p6, %s735_s17, %s51_s23  }
   0xf   : > { %s968_s26 = scalar_select %p820_p7, 1, 0 }
  0x10   : > { %s560_s30 = sshll.u32 %s829_s28, 3  ;;  %s838_s7 = scalar_lea.hbm %s961_s0, %s561_s29 }
  0x11   : > { %s206_s8 = scalar_lea.vmem [#allocation2], %s560_s30  ;;  %p844_p9 = pnand %p583_p8, %p813_p3 }
  0x12   : > { %s216_s9 = sshll.u32 %s206_s8, 4  ;;  %s203_s11 = scalar_lea.sflag [#allocation3], %s829_s28  ;;  %s848_s9 = int_to_ptr.vmem [resolvable:$true] %s216_s9 }
  0x13   : > { %s633_s12 = scalar_lea.hbm %s838_s7, 128  ;;  %p635_p13 = pneg %p844_p9 }
  0x14   : > { %p634_p12 = scmp.ne.s32.totalorder %s838_s7, %s633_s12  ;;  %s638_s15 = scalar_lea.hbm %s961_s0, 256 }
  0x15   : > { %p639_p2 = scmp.lt.u32.totalorder %s838_s7, %s961_s0  ;;  %p640_p3 = scmp.lt.u32.totalorder %s638_s15, %s633_s12 }
  0x16   : > { %p636_p0 = pnand %p635_p13, %p634_p12  ;;  %p642_p5 = scmp.lt.u32.totalorder %s633_s12, %s838_s7 }
  0x17   : > { %p641_p4 = por %p640_p3, %p639_p2 }
  0x18   : > { %p637_p1 = pneg %p636_p0 }
  0x19   : > { %p643_p6 = por %p642_p5, %p641_p4 }
  0x1b   : > { %p644_p8 = pnand %p643_p6, %p637_p1 }
  0x1d   : > { %647 = shalt.err (!%p644_p8)
}
  0x1e   : > { %s648_s24 = scalar_lea.vmem %s848_s9, 128  ;;  %s749_s25 = smov [#allocation2]  }
  0x1f   : > { %p649_p12 = scmp.ne.s32.totalorder %s848_s9, %s648_s24  ;;  %s653_s5 = sshll.u32 %s749_s25, 4  ;;  %s654_s5 = int_to_ptr.vmem [resolvable:$false] %s653_s5 }
  0x20   : > { %s655_s6 = scalar_lea.vmem %s654_s5, 256  ;;  %p656_p11 = scmp.lt.s32.totalorder %s848_s9, %s654_s5 }
  0x21   : > { %p651_p0 = pnand %p649_p12, %p635_p13  ;;  %p657_p2 = scmp.lt.s32.totalorder %s655_s6, %s648_s24 }
  0x23   : > { %p652_p10 = pneg %p651_p0  ;;  %p658_p3 = por %p657_p2, %p656_p11 }
  0x25   : > { %p659_p4 = pnand %p658_p3, %p652_p10 }
  0x27   : > { %662 = shalt.err (!%p659_p4)
}
  0x28   : > { %579 = dma.hbm_to_vmem [thread:$0]  (!%p844_p9), %s838_s7, 128, %s848_s9, %s203_s11  }
  0x29   : > { %p970_p1 = scmp.lt.s32.totalorder %s747_s20, 3  ;;  %p971_p5 = scmp.ge.s32.totalorder %s747_s20, 1 }
  0x2a   : > { %s891_s14 = scalar_lea.hbm %s962_s1, %s561_s29  ;;  %s227_s15 = scalar_lea.vmem [#allocation4], %s560_s30 }
  0x2b   : > { %p882_p6 = pnand %p971_p5, %p970_p1  ;;  %s237_s21 = sshll.u32 %s227_s15, 4  ;;  %s238_s21 = int_to_ptr.vmem [resolvable:$true] %s237_s21 }
  0x2c   : > { %s224_s7 = scalar_lea.sflag [#allocation5], %s829_s28  ;;  %s663_s9 = scalar_lea.hbm %s891_s14, 128 }
  0x2d   : > { %s972_s8 = scalar_select %p882_p6, 1, 0 }
  0x2e   : > { %p664_p10 = scmp.ne.s32.totalorder %s891_s14, %s663_s9  ;;  %s668_s29 = scalar_lea.hbm %s962_s1, 256 }
  0x2f   : > { %p669_p12 = scmp.lt.u32.totalorder %s891_s14, %s962_s1  ;;  %p670_p0 = scmp.lt.u32.totalorder %s668_s29, %s663_s9 }
  0x30   : > { %p666_p11 = pnand %p664_p10, %p635_p13  ;;  %p672_p3 = scmp.lt.u32.totalorder %s663_s9, %s891_s14 }
  0x31   : > { %p671_p2 = por %p670_p0, %p669_p12 }
  0x32   : > { %p667_p8 = pneg %p666_p11 }
  0x33   : > { %p673_p4 = por %p672_p3, %p671_p2 }
  0x35   : > { %p674_p1 = pnand %p673_p4, %p667_p8 }
  0x37   : > { %677 = shalt.err (!%p674_p1)
}
  0x38   : > { %s678_s28 = scalar_lea.vmem %s238_s21, 128  ;;  %s750_s30 = smov [#allocation4]  }
  0x39   : > { %p679_p5 = scmp.ne.s32.totalorder %s238_s21, %s678_s28  ;;  %s683_s5 = sshll.u32 %s750_s30, 4  ;;  %s684_s5 = int_to_ptr.vmem [resolvable:$false] %s683_s5 }
  0x3a   : > { %s685_s6 = scalar_lea.vmem %s684_s5, 256  ;;  %p686_p7 = scmp.lt.s32.totalorder %s238_s21, %s684_s5 }
  0x3b   : > { %p681_p10 = pnand %p679_p5, %p635_p13  ;;  %p687_p6 = scmp.lt.s32.totalorder %s685_s6, %s678_s28 }
  0x3d   : > { %p682_p11 = pneg %p681_p10  ;;  %p688_p0 = por %p687_p6, %p686_p7 }
  0x3f   : > { %p689_p12 = pnand %p688_p0, %p682_p11 }
  0x41   : > { %692 = shalt.err (!%p689_p12)
}
  0x42   : > { %582 = dma.hbm_to_vmem [thread:$0]  (!%p844_p9), %s891_s14, 128, %s238_s21, %s224_s7  }
  0x43   : > { %p973_p8 = scmp.ne.s32.totalorder %s972_s8, 0 }
  0x44   : > { %s248_s12 = sand.u32 (!%p973_p8), 1, %s731_s16   ;;  %p974_p13 = scmp.ne.s32.totalorder (!%p973_p8), %s968_s26, 0 }
  0x45   : > { %246 = sbr.rel (%p973_p8) target bundleno = 231 (0xe7), region = 28  ;;  %s565_s13 = sshll.u32 (!%p973_p8), %s248_s12, 3 }
  0x46   : > { %s249_s15 = scalar_lea.sflag (!%p973_p8), [#allocation3], %s248_s12  ;;  %s252_s9 = scalar_lea.vmem (!%p973_p8), [#allocation2], %s565_s13 }
  0x4c   : > { %718 = dma.done.wait (%p974_p13), %s249_s15, 128  }
  0x4d   : > { %720 = vsyncadd (%p974_p13), %s249_s15, 4294967168  ;;  %s258_s11 = scalar_lea.sflag [#allocation5], %s248_s12  ;;  %s261_s23 = scalar_lea.vmem [#allocation4], %s565_s13 }
  0x4e   : > { %722 = dma.done.wait (%p974_p13), %s258_s11, 128  }
  0x4f   : > { %724 = vsyncadd (%p974_p13), %s258_s11, 4294967168  ;;  %p309_p7 = scmp.lt.s32.totalorder %s739_s18, 1  ;;  %vm334_vm0 = vcmask 7168   ;;  %v751_v0 = vmov 0.0   ;;  %v338_v1 = vld [vmem:[%s252_s9] sm:$0xff]  ;;  %v339_v2 = vld [vmem:[%s261_s23] sm:$0xff] }
  0x50   : > { %v341_v3 = vmul.f32 %v338_v1, %v338_v1  ;;  %v354_v4 = vmul.f32 %v339_v2, %v338_v1  ;;  %v348_v5 = vmul.f32 %v339_v2, %v339_v2 }
  0x51   : > { %s983_s18 = smov (!%p309_p7, %s739_s18), 1 }
  0x52   : > { %s567_s10 = sshll.u32 %s983_s18, 3  ;;  %342 = vadd.xlane.f32.xlu0 %v341_v3  ;;  %355 = vadd.xlane.f32.xlu1 %v354_v4 }
  0x53   : > { %s315_s21 = scalar_lea.vmem %s963_s2, %s567_s10  ;;  %s329_s29 = scalar_lea.vmem %s965_s4, %s567_s10 }
  0x54   : > { %335 = vst.msk [vmem:[%s315_s21] sm:$0xff] %vm334_vm0, %v751_v0  ;;  %s322_s25 = scalar_lea.vmem %s964_s3, %s567_s10  ;;  %337 = vst.msk [vmem:[%s329_s29] sm:$0xff] %vm334_vm0, %v751_v0 }
  0x55   : > { %336 = vst.msk [vmem:[%s322_s25] sm:$0xff] %vm334_vm0, %v751_v0 }
  0x56   : > { %349 = vadd.xlane.f32.xlu0 %v348_v5 }
  0x5b   : > { %v340_v6 = vld [vmem:[%s315_s21] sm:$0xff] }
  0x5c   : > { %v353_v7 = vld [vmem:[%s329_s29] sm:$0xff] }
  0x5d   : > { %v347_v12 = vld [vmem:[%s322_s25] sm:$0xff] }
  0xdf   : > { %v343_v8 = vpop.xlane.xlu0 %342  ;;  %v356_v9 = vpop.xlane.xlu1 %355 }
  0xe0   : > { %v344_v10 = vadd.f32 %v343_v8, %v340_v6  ;;  %v357_v11 = vadd.f32 %v356_v9, %v353_v7 }
  0xe2   : > { %346 = vst.msk [vmem:[%s315_s21] sm:$0xff] %vm334_vm0, %v344_v10  ;;  %358 = vst.msk [vmem:[%s329_s29] sm:$0xff] %vm334_vm0, %v357_v11 }
  0xe3   : > { %v350_v13 = vpop.xlane.xlu0 %349 }
  0xe4   : > { %v351_v14 = vadd.f32 %v350_v13, %v347_v12 }
  0xe6   : > { %352 = vst.msk [vmem:[%s322_s25] sm:$0xff] %vm334_vm0, %v351_v14 }
  0xe7 PF: > { %s21_s20 = sadd.s32 1, %s747_s20   ;;  %s975_s15 = smov %s731_s16 }
  0xe8   : > { %p18_p9 = scmp.ge.s32.totalorder %s21_s20, 4   ;;  %s976_s16 = smov %s735_s17 }
  0xe9   : > { %s977_s17 = smov %s826_s27  ;;  %s978_s18 = smov %s743_s19 }
  0xea   : > { %s979_s19 = smov %s981_s22  ;;  %20 = sbr.rel (!%p18_p9) target bundleno = 6 (0x6), region = 109 }
  0xf1   :  { %424 = vsyncpa [#allocation3], 1 }
  0xf2   :  { %426 = vsyncpa [#allocation3 + $0x1], 1 }
  0xf3   :  { %427 = vsyncpa [#allocation5], 1 }
  0xf4   :  { %429 = vsyncpa [#allocation5 + $0x1], 1 }

</bundles_post_ra>
